<compile_context>
chip_gen: v7x
topology: tpu7x:2x2x1
jax: 0.10.0
libtpu: 0.0.40
codegen_flags: <defaults>
</compile_context>

<pallas_src>
import functools
import math

import jax
import jax.numpy as jnp
from jax import lax
from jax.experimental import pallas as pl
from jax.experimental.pallas import tpu as pltpu


def _cdiv(a, b):
    return -(-a // b)


def _round_up(n, m):
    return _cdiv(n, m) * m


def _packing_factor(d, lane=128, max_r=16):
    """Logical rows packed per physical row so the packed last dim is a multiple of 128."""
    if d <= 0 or d >= lane:
        return 1
    r = lane // math.gcd(d, lane)        # lcm(d, 128) / d
    return r if 1 < r <= max_r else 1


def _anfis_mlp_kernel(x_ref, w1_ref, b1_ref, w2_ref, b2_ref, w3_ref, b3_ref,
                      o_ref, *, sub):
    # Weights/biases are VMEM-resident (constant index_map); load once per grid step.
    w1 = w1_ref[...]
    w2 = w2_ref[...]
    w3 = w3_ref[...]
    b1 = b1_ref[...].astype(jnp.float32)
    b2 = b2_ref[...].astype(jnp.float32)
    b3 = b3_ref[...].astype(jnp.float32)

    n_sub = o_ref.shape[0] // sub        # static

    def body(s, carry):
        row = pl.multiple_of(s * sub, sub)
        x = x_ref[pl.ds(row, sub), :].astype(w1.dtype)
        # Layer 1 (packed rows x block-diagonal W1), f32 accumulation.
        h1 = jnp.dot(x, w1, preferred_element_type=jnp.float32)
        h1 = jnp.maximum(h1 + b1, 0.0)
        # TODO(synk): training-mode dropout would mask h1/h2 here; eval = identity.
        h2 = jnp.dot(h1.astype(w2.dtype), w2, preferred_element_type=jnp.float32)
        h2 = jnp.maximum(h2 + b2, 0.0)
        out = jnp.dot(h2.astype(w3.dtype), w3, preferred_element_type=jnp.float32) + b3
        o_ref[pl.ds(row, sub), :] = out.astype(o_ref.dtype)
        return carry

    lax.fori_loop(0, n_sub, body, 0, unroll=True)


def anfis_forward(x, params, *, tm=16384):
    """Fused AnfisNet forward (eval mode).

    x: (B, input_dim). params: dict w1,b1,w2,b2,w3,b3 with weights stored as (in, out).
    tm: target logical rows per grid step (clamped by batch size and a VMEM budget).
    """
    B, D = x.shape
    w1, b1 = params["w1"], params["b1"]   # (D, H1), (1, H1)
    w2, b2 = params["w2"], params["b2"]   # (H1, H2), (1, H2)
    w3, b3 = params["w3"], params["b3"]   # (H2, O), (1, O)
    H1, H2, O = w1.shape[1], w2.shape[1], w3.shape[1]

    # Low-precision MXU path only if the caller already supplies x in that dtype
    # (a wrapper-side cast would ADD HBM traffic, not remove it).
    if jnp.issubdtype(x.dtype, jnp.floating) and jnp.dtype(x.dtype).itemsize < 4:
        w_dtype = x.dtype
    else:
        w_dtype = jnp.float32
        x = x.astype(jnp.float32)

    # ---- Lane-dense packing: r logical rows per physical row. -------------------
    r = _packing_factor(D)
    eye = jnp.eye(r, dtype=jnp.float32)
    w1p = jnp.kron(eye, w1.astype(jnp.float32)).astype(w_dtype)   # (r*D,  r*H1)
    w2p = jnp.kron(eye, w2.astype(jnp.float32)).astype(w_dtype)   # (r*H1, r*H2)
    w3p = jnp.kron(eye, w3.astype(jnp.float32)).astype(w_dtype)   # (r*H2, r*O)
    b1p = jnp.tile(b1.astype(jnp.float32), (1, r))
    b2p = jnp.tile(b2.astype(jnp.float32), (1, r))
    b3p = jnp.tile(b3.astype(jnp.float32), (1, r))
    Dp, H1p, H2p, Op = r * D, r * H1, r * H2, r * O

    x_bytes = jnp.dtype(x.dtype).itemsize
    weight_bytes = sum(int(a.size) * a.dtype.itemsize
                       for a in (w1p, b1p, w2p, b2p, w3p, b3p))

    # ---- Batch-tile sizing in packed rows. ---------------------------------------
    rows = _cdiv(B, r)                            # logical packed rows needed
    tm_p = max(8, _round_up(_cdiv(tm, r), 8))     # requested packed rows per step

    # VMEM budget: stay well under v7x's 64 MiB physical VMEM (v5e/v6e have 128 MiB).
    vmem_budget = 40 << 20
    per_row = 2 * (Dp * x_bytes + Op * 4)         # double-buffered in + out streams
    cap = (vmem_budget - 2 * weight_bytes - (1 << 20)) // per_row
    tm_p = min(tm_p, max(8, (cap // 8) * 8))

    tm_p = min(tm_p, _round_up(rows, 8))
    # Keep >= 2 grid steps for big batches so the "parallel" axis can shard across
    # both TensorCores on v7x (negligible extra step cost on 1-TC chips).
    if rows >= 512 and _cdiv(rows, tm_p) == 1:
        tm_p = _round_up(_cdiv(rows, 2), 8)
    if tm_p >= 128:
        tm_p = _round_up(tm_p, 128)
        sub = 128                                 # in-kernel sub-chunk (bounds h1/h2)
    else:
        sub = tm_p

    n_tiles = _cdiv(rows, tm_p)
    rows_total = n_tiles * tm_p
    Bp = rows_total * r
    if Bp != B:
        x = jnp.pad(x, ((0, Bp - B), (0, 0)))     # zero rows -> sliced off below
    xp = x.reshape(rows_total, Dp)                # free: row-major contiguous repack

    out_dtype = jnp.float32
    cost = pl.CostEstimate(
        flops=2 * rows_total * (Dp * H1p + H1p * H2p + H2p * Op),
        transcendentals=0,
        bytes_accessed=rows_total * Dp * x_bytes + weight_bytes
        + rows_total * Op * jnp.dtype(out_dtype).itemsize,
    )

    out_p = pl.pallas_call(
        functools.partial(_anfis_mlp_kernel, sub=sub),
        out_shape=jax.ShapeDtypeStruct((rows_total, Op), out_dtype),
        grid_spec=pltpu.PrefetchScalarGridSpec(
            num_scalar_prefetch=0,
            grid=(n_tiles,),
            in_specs=[
                pl.BlockSpec((tm_p, Dp), lambda i: (i, 0)),   # packed x (streams)
                pl.BlockSpec((Dp, H1p), lambda i: (0, 0)),    # VMEM-resident weights
                pl.BlockSpec((1, H1p), lambda i: (0, 0)),
                pl.BlockSpec((H1p, H2p), lambda i: (0, 0)),
                pl.BlockSpec((1, H2p), lambda i: (0, 0)),
                pl.BlockSpec((H2p, Op), lambda i: (0, 0)),
                pl.BlockSpec((1, Op), lambda i: (0, 0)),
            ],
            out_specs=pl.BlockSpec((tm_p, Op), lambda i: (i, 0)),
        ),
        compiler_params=pltpu.CompilerParams(
            dimension_semantics=("parallel",),
            vmem_limit_bytes=48 << 20,
        ),
        cost_estimate=cost,
    )(xp, w1p, b1p, w2p, b2p, w3p, b3p)

    # Unpack (rows_total, r*O) -> (Bp, O): free row-major reshape; drop padded rows.
    return out_p.reshape(Bp, O)[:B]


def init_params(key, input_dim, hidden1=64, hidden2=32, output_dim=5):
    """Deterministic synthetic init (PyTorch-Linear-like uniform fan-in scaling)."""
    ks = jax.random.split(key, 6)

    def lin(kw, kb, fan_in, fan_out):
        bound = 1.0 / jnp.sqrt(float(fan_in))
        w = jax.random.uniform(kw, (fan_in, fan_out), jnp.float32, -bound, bound)
        b = jax.random.uniform(kb, (1, fan_out), jnp.float32, -bound, bound)
        return w, b

    w1, b1 = lin(ks[0], ks[1], input_dim, hidden1)
    w2, b2 = lin(ks[2], ks[3], hidden1, hidden2)
    w3, b3 = lin(ks[4], ks[5], hidden2, output_dim)
    return dict(w1=w1, b1=b1, w2=w2, b2=b2, w3=w3, b3=b3)


def anfis_reference(x, p):
    h1 = jnp.maximum(x @ p["w1"] + p["b1"], 0.0)
    h2 = jnp.maximum(h1 @ p["w2"] + p["b2"], 0.0)
    return h2 @ p["w3"] + p["b3"]


if __name__ == "__main__":
    key = jax.random.PRNGKey(0)
    k_x, k_p, k_x2 = jax.random.split(key, 3)

    input_dim = 16
    params = init_params(k_p, input_dim, hidden1=64, hidden2=32, output_dim=5)

    # Small batch not aligned to the packing factor or sublane tile: exercises
    # tail zero-padding and the single-sub-chunk path.
    B = 20
    x = jax.random.normal(k_x, (B, input_dim), jnp.float32)
    out = jax.block_until_ready(anfis_forward(x, params))
    ref = anfis_reference(x, params)
    assert out.shape == (B, 5), out.shape
    assert jnp.allclose(out, ref, atol=1e-4, rtol=1e-4), "f32 small-batch mismatch"

    # Larger batch: multi-tile grid + unrolled in-kernel sub-chunking.
    B2 = 4096
    x2 = jax.random.normal(k_x2, (B2, input_dim), jnp.float32)
    out2 = jax.block_until_ready(anfis_forward(x2, params))
    ref2 = anfis_reference(x2, params)
    assert out2.shape == (B2, 5), out2.shape
    assert jnp.allclose(out2, ref2, atol=1e-4, rtol=1e-4), "f32 large-batch mismatch"

    # bf16 path only when the CALLER produces bf16 activations (no wrapper cast).
    x_bf16 = x.astype(jnp.bfloat16)
    out_bf16 = jax.block_until_ready(anfis_forward(x_bf16, params))
    assert jnp.allclose(out_bf16.astype(jnp.float32), ref, atol=3e-1, rtol=1e-1), \
        "bf16 sanity check failed"

    print("KERNEL_OK")
</pallas_src>

<mosaic_0001>
module attributes {stable_mosaic.version = 11 : i64} {
  func.func @_anfis_mlp_kernel(%arg0: i32, %arg1: memref<8x128xf32, #tpu.memory_space<vmem>>, %arg2: memref<128x512xf32, #tpu.memory_space<vmem>>, %arg3: memref<1x512xf32, #tpu.memory_space<vmem>>, %arg4: memref<512x256xf32, #tpu.memory_space<vmem>>, %arg5: memref<1x256xf32, #tpu.memory_space<vmem>>, %arg6: memref<256x40xf32, #tpu.memory_space<vmem>>, %arg7: memref<1x40xf32, #tpu.memory_space<vmem>>, %arg8: memref<8x40xf32, #tpu.memory_space<vmem>>) attributes {dimension_semantics = [#tpu.dimension_semantics<parallel>], iteration_bounds = array<i64: 1>, scalar_prefetch = 0 : i64, scratch_operands = 0 : i64, tpu.core_type = #tpu.core_type<tc>, window_params = [{transform_indices = @transform_0, window_bounds = array<i64: 8, 128>}, {pipeline_mode = #tpu.pipeline_mode<synchronous>, transform_indices = @transform_1, window_bounds = array<i64: 128, 512>}, {pipeline_mode = #tpu.pipeline_mode<synchronous>, transform_indices = @transform_2, window_bounds = array<i64: 1, 512>}, {pipeline_mode = #tpu.pipeline_mode<synchronous>, transform_indices = @transform_3, window_bounds = array<i64: 512, 256>}, {pipeline_mode = #tpu.pipeline_mode<synchronous>, transform_indices = @transform_4, window_bounds = array<i64: 1, 256>}, {pipeline_mode = #tpu.pipeline_mode<synchronous>, transform_indices = @transform_5, window_bounds = array<i64: 256, 40>}, {pipeline_mode = #tpu.pipeline_mode<synchronous>, transform_indices = @transform_6, window_bounds = array<i64: 1, 40>}, {transform_indices = @transform_7, window_bounds = array<i64: 8, 40>}]} {
    %c0 = arith.constant 0 : index
    %c0_0 = arith.constant 0 : index
    %0 = vector.load %arg2[%c0, %c0_0] : memref<128x512xf32, #tpu.memory_space<vmem>>, vector<128x512xf32>
    %c0_1 = arith.constant 0 : index
    %c0_2 = arith.constant 0 : index
    %1 = vector.load %arg4[%c0_1, %c0_2] : memref<512x256xf32, #tpu.memory_space<vmem>>, vector<512x256xf32>
    %c0_3 = arith.constant 0 : index
    %c0_4 = arith.constant 0 : index
    %2 = vector.load %arg6[%c0_3, %c0_4] : memref<256x40xf32, #tpu.memory_space<vmem>>, vector<256x40xf32>
    %c0_5 = arith.constant 0 : index
    %c0_6 = arith.constant 0 : index
    %3 = vector.load %arg3[%c0_5, %c0_6] : memref<1x512xf32, #tpu.memory_space<vmem>>, vector<1x512xf32>
    %c0_7 = arith.constant 0 : index
    %c0_8 = arith.constant 0 : index
    %4 = vector.load %arg5[%c0_7, %c0_8] : memref<1x256xf32, #tpu.memory_space<vmem>>, vector<1x256xf32>
    %c0_9 = arith.constant 0 : index
    %c0_10 = arith.constant 0 : index
    %5 = vector.load %arg7[%c0_9, %c0_10] : memref<1x40xf32, #tpu.memory_space<vmem>>, vector<1x40xf32>
    %c0_i32 = arith.constant 0 : i32
    %c8_i32 = arith.constant 8 : i32
    %6 = arith.muli %c0_i32, %c8_i32 : i32
    %7 = tpu.assume_multiple %6, 8 : i32
    %8 = arith.index_cast %7 : i32 to index
    %c0_11 = arith.constant 0 : index
    %9 = vector.load %arg1[%8, %c0_11] : memref<8x128xf32, #tpu.memory_space<vmem>>, vector<8x128xf32>
    %cst = arith.constant dense<0.000000e+00> : vector<8x512xf32>
    %10 = tpu.matmul %9, %0, %cst {dimension_numbers = #tpu.dot_dimension_numbers<[1], [0], [0], [1], [0, 0, 1, 1], [], []>} : vector<8x128xf32>, vector<128x512xf32>, vector<8x512xf32> -> vector<8x512xf32>
    %11 = vector.broadcast %3 : vector<1x512xf32> to vector<8x512xf32>
    %12 = arith.addf %10, %11 : vector<8x512xf32>
    %cst_12 = arith.constant 0.000000e+00 : f32
    %13 = vector.broadcast %cst_12 : f32 to vector<8x512xf32>
    %14 = arith.maximumf %12, %13 : vector<8x512xf32>
    %cst_13 = arith.constant dense<0.000000e+00> : vector<8x256xf32>
    %15 = tpu.matmul %14, %1, %cst_13 {dimension_numbers = #tpu.dot_dimension_numbers<[1], [0], [0], [1], [0, 0, 1, 1], [], []>} : vector<8x512xf32>, vector<512x256xf32>, vector<8x256xf32> -> vector<8x256xf32>
    %16 = vector.broadcast %4 : vector<1x256xf32> to vector<8x256xf32>
    %17 = arith.addf %15, %16 : vector<8x256xf32>
    %cst_14 = arith.constant 0.000000e+00 : f32
    %18 = vector.broadcast %cst_14 : f32 to vector<8x256xf32>
    %19 = arith.maximumf %17, %18 : vector<8x256xf32>
    %cst_15 = arith.constant dense<0.000000e+00> : vector<8x40xf32>
    %20 = tpu.matmul %19, %2, %cst_15 {dimension_numbers = #tpu.dot_dimension_numbers<[1], [0], [0], [1], [0, 0, 1, 1], [], []>} : vector<8x256xf32>, vector<256x40xf32>, vector<8x40xf32> -> vector<8x40xf32>
    %21 = vector.broadcast %5 : vector<1x40xf32> to vector<8x40xf32>
    %22 = arith.addf %20, %21 : vector<8x40xf32>
    %23 = arith.index_cast %7 : i32 to index
    %c0_16 = arith.constant 0 : index
    %24 = vector.load %arg8[%23, %c0_16] : memref<8x40xf32, #tpu.memory_space<vmem>>, vector<8x40xf32>
    tpu.vector_store %arg8[%23, %c0_16], %22 {strides = array<i32>} : memref<8x40xf32, #tpu.memory_space<vmem>>, vector<8x40xf32>,
    %c1_i32 = arith.constant 1 : i32
    return
  }
  func.func @transform_0(%arg0: i32) -> (i32, i32) {
    %c0_i32 = arith.constant 0 : i32
    %c0_i32_0 = arith.constant 0 : i32
    return %arg0, %c0_i32 : i32, i32
  }
  func.func @transform_1(%arg0: i32) -> (i32, i32) {
    %c0_i32 = arith.constant 0 : i32
    %c0_i32_0 = arith.constant 0 : i32
    %c0_i32_1 = arith.constant 0 : i32
    return %c0_i32, %c0_i32_0 : i32, i32
  }
  func.func @transform_2(%arg0: i32) -> (i32, i32) {
    %c0_i32 = arith.constant 0 : i32
    %c0_i32_0 = arith.constant 0 : i32
    %c0_i32_1 = arith.constant 0 : i32
    return %c0_i32, %c0_i32_0 : i32, i32
  }
  func.func @transform_3(%arg0: i32) -> (i32, i32) {
    %c0_i32 = arith.constant 0 : i32
    %c0_i32_0 = arith.constant 0 : i32
    %c0_i32_1 = arith.constant 0 : i32
    return %c0_i32, %c0_i32_0 : i32, i32
  }
  func.func @transform_4(%arg0: i32) -> (i32, i32) {
    %c0_i32 = arith.constant 0 : i32
    %c0_i32_0 = arith.constant 0 : i32
    %c0_i32_1 = arith.constant 0 : i32
    return %c0_i32, %c0_i32_0 : i32, i32
  }
  func.func @transform_5(%arg0: i32) -> (i32, i32) {
    %c0_i32 = arith.constant 0 : i32
    %c0_i32_0 = arith.constant 0 : i32
    %c0_i32_1 = arith.constant 0 : i32
    return %c0_i32, %c0_i32_0 : i32, i32
  }
  func.func @transform_6(%arg0: i32) -> (i32, i32) {
    %c0_i32 = arith.constant 0 : i32
    %c0_i32_0 = arith.constant 0 : i32
    %c0_i32_1 = arith.constant 0 : i32
    return %c0_i32, %c0_i32_0 : i32, i32
  }
  func.func @transform_7(%arg0: i32) -> (i32, i32) {
    %c0_i32 = arith.constant 0 : i32
    %c0_i32_0 = arith.constant 0 : i32
    return %arg0, %c0_i32 : i32, i32
  }
}

</mosaic_0001>

<bundles_post_ra>
// kernel: tpu_custom_call.1
= control target key start
LH: loop header
LB: loop body
LE: loop exit
PB: predicated region body
PF: predicated region fallthrough
CT: control target
= control target key end

     0   :  { %12 = vsyncpa [#allocation3], 0  ;;  %s1264_s0 = inlined_call_operand.vmem [shape: f32[8,128], index: 0, kind: input, shape index: {}]   ;;  %s1265_s1 = inlined_call_operand.hbm [shape: f32[128,512], index: 1, kind: input, shape index: {}]   ;;  %s1266_s2 = inlined_call_operand.vmem [shape: f32[1,512], index: 2, kind: input, shape index: {}]   ;;  %s1267_s3 = inlined_call_operand.hbm [shape: f32[512,256], index: 3, kind: input, shape index: {}]   ;;  %s1268_s4 = inlined_call_operand.vmem [shape: f32[1,256], index: 4, kind: input, shape index: {}]   ;;  %s1269_s5 = inlined_call_operand.vmem [shape: f32[256,40], index: 5, kind: input, shape index: {}]   ;;  %s1270_s6 = inlined_call_operand.vmem [shape: f32[1,40], index: 6, kind: input, shape index: {}]   ;;  %s1271_s7 = inlined_call_operand.hbm [shape: f32[8,40], index: 7, kind: output, shape index: {}]  }
   0x1   :  { %13 = vsyncpa [#allocation6], 0 }
   0x2   :  { %14 = vsyncpa [#allocation4], 0  ;;  %s1043_s24 = smov [#allocation2]   ;;  %s971_s28 = scalar_lea.hbm %s1265_s1, 8192 }
   0x3   :  { %s22_s25 = sshll.u32 %s1043_s24, 4  ;;  %p972_p0 = scmp.ne.s32.totalorder %s1265_s1, %s971_s28  ;;  %s23_s25 = int_to_ptr.vmem [resolvable:$true] %s22_s25 }
   0x4   :  { %p975_p1 = scmp.lt.u32.totalorder %s971_s28, %s1265_s1 }
   0x6   :  { %p977_p2 = pnand %p975_p1, %p972_p0 }
   0x8   :  { %980 = shalt.err (!%p977_p2)
}
   0x9   :  { %s981_s10 = scalar_lea.vmem %s23_s25, 8192  ;;  %p986_p4 = scmp.lt.s32.totalorder %s23_s25, %s23_s25 }
   0xa   :  { %p982_p3 = scmp.ne.s32.totalorder %s23_s25, %s981_s10  ;;  %p987_p5 = scmp.lt.s32.totalorder %s981_s10, %s981_s10 }
   0xc   :  { %p988_p6 = por %p987_p5, %p986_p4 }
   0xe   :  { %p989_p7 = pnand %p988_p6, %p982_p3 }
  0x10   :  { %992 = shalt.err (!%p989_p7)
}
  0x11   :  { %s1044_s11 = smov 512   ;;  %s1045_s12 = smov 32  }
  0x12   :  { %28 = dma.hbm_to_vmem [thread:$0]  %s1265_s1, 8192, %s23_s25, [#allocation3], %s1044_s11, %s1044_s11, %s1045_s12  }
  0x13   :  { %s1046_s15 = smov [#allocation5]   ;;  %s993_s19 = scalar_lea.hbm %s1267_s3, 16384 }
  0x14   :  { %s36_s16 = sshll.u32 %s1046_s15, 4  ;;  %p994_p8 = scmp.ne.s32.totalorder %s1267_s3, %s993_s19  ;;  %s37_s16 = int_to_ptr.vmem [resolvable:$true] %s36_s16 }
  0x15   :  { %p997_p9 = scmp.lt.u32.totalorder %s993_s19, %s1267_s3 }
  0x17   :  { %p999_p10 = pnand %p997_p9, %p994_p8 }
  0x19   :  { %1002 = shalt.err (!%p999_p10)
}
  0x1a   :  { %s1003_s24 = scalar_lea.vmem %s37_s16, 16384  ;;  %p1008_p12 = scmp.lt.s32.totalorder %s37_s16, %s37_s16 }
  0x1b   :  { %p1004_p11 = scmp.ne.s32.totalorder %s37_s16, %s1003_s24  ;;  %p1009_p13 = scmp.lt.s32.totalorder %s1003_s24, %s1003_s24 }
  0x1d   :  { %p1010_p0 = por %p1009_p13, %p1008_p12 }
  0x1f   :  { %p1011_p1 = pnand %p1010_p0, %p1004_p11 }
  0x21   :  { %1014 = shalt.err (!%p1011_p1)
}
  0x22   :  { %s1047_s1 = smov 256   ;;  %s1048_s25 = smov 16  }
  0x23   :  { %42 = dma.hbm_to_vmem [thread:$0]  %s1267_s3, 16384, %s37_s16, [#allocation6], %s1047_s1, %s1047_s1, %s1048_s25  }
  0x24   :  { %1037 = dma.done.wait [#allocation3], 8192  }
  0x25   :  { %1038 = vsyncadd [#allocation3], 4294959104 }
  0x26   :  { %1039 = dma.done.wait [#allocation6], 16384  }
  0x27   :  { %1040 = vsyncadd [#allocation6], 4294950912  ;;  %v1049_v0 = vmov 0.0   ;;  %v56_v1 = vld [vmem:[#allocation2 + $0x8] sm:$0xff]  ;;  %v55_v3 = vld [vmem:[#allocation2] sm:$0xff]  ;;  %vm681_vm0 = vcmask 326656  }
  0x28   :  { %368 = vmatprep.mubr.f32.mxu1 %v1049_v0  ;;  %v60_v2 = vld [vmem:[#allocation2 + $0x28] sm:$0xff]  ;;  %v59_v5 = vld [vmem:[#allocation2 + $0x20] sm:$0xff]  ;;  %v122_v45 = vld [vmem:[#allocation5 + $0x18] sm:$0xff] }
  0x29   :  { %v735_v4 = vpack.c.bf16 %v60_v2, %v56_v1  ;;  %v64_v6 = vld [vmem:[#allocation2 + $0x48] sm:$0xff]  ;;  %v737_v8 = vpack.c.bf16 %v59_v5, %v55_v3  ;;  %v63_v10 = vld [vmem:[#allocation2 + $0x40] sm:$0xff]  ;;  %v121_v47 = vld [vmem:[#allocation5 + $0x10] sm:$0xff] }
  0x2a   :  { %v68_v7 = vld [vmem:[#allocation2 + $0x68] sm:$0xff]  ;;  %v67_v11 = vld [vmem:[#allocation2 + $0x60] sm:$0xff]  ;;  %v126_v51 = vld [vmem:[#allocation5 + $0x38] sm:$0xff] }
  0x2b   :  { %v739_v9 = vpack.c.bf16 %v68_v7, %v64_v6  ;;  %v72_v12 = vld [vmem:[#allocation2 + $0x88] sm:$0xff]  ;;  %736 = vmatprep.subr.bf16.mxu1 %v735_v4  ;;  %v741_v14 = vpack.c.bf16 %v67_v11, %v63_v10  ;;  %v71_v16 = vld [vmem:[#allocation2 + $0x80] sm:$0xff]  ;;  %v125_v55 = vld [vmem:[#allocation5 + $0x30] sm:$0xff] }
  0x2c   :  { %v76_v13 = vld [vmem:[#allocation2 + $0xa8] sm:$0xff]  ;;  %738 = vmatpush1.bf16.msra.mxu1 %v737_v8  ;;  %v75_v17 = vld [vmem:[#allocation2 + $0xa0] sm:$0xff]  ;;  %v130_v57 = vld [vmem:[#allocation5 + $0x58] sm:$0xff] }
  0x2d   :  { %740 = vmatprep.subr.bf16.mxu1 %v739_v9  ;;  %v743_v15 = vpack.c.bf16 %v76_v13, %v72_v12  ;;  %v80_v18 = vld [vmem:[#allocation2 + $0xc8] sm:$0xff]  ;;  %v745_v20 = vpack.c.bf16 %v75_v17, %v71_v16  ;;  %v79_v22 = vld [vmem:[#allocation2 + $0xc0] sm:$0xff]  ;;  %v58_v61 = vld [vmem:[#allocation2 + $0x18] sm:$0xff] }
  0x2e   :  { %v84_v19 = vld [vmem:[#allocation2 + $0xe8] sm:$0xff]  ;;  %v83_v23 = vld [vmem:[#allocation2 + $0xe0] sm:$0xff]  ;;  %v62_v62 = vld [vmem:[#allocation2 + $0x38] sm:$0xff] }
  0x2f   :  { %v747_v21 = vpack.c.bf16 %v84_v19, %v80_v18  ;;  %v88_v24 = vld [vmem:[#allocation2 + $0x108] sm:$0xff]  ;;  %v749_v26 = vpack.c.bf16 %v83_v23, %v79_v22  ;;  %v87_v28 = vld [vmem:[#allocation2 + $0x100] sm:$0xff]  ;;  %v129_v3 = vld [vmem:[#allocation5 + $0x50] sm:$0xff]  ;;  %v767_v7 = vpack.c.bf16 %v62_v62, %v58_v61 }
  0x30   :  { %742 = vmatpush1.bf16.msra.mxu1 %v741_v14  ;;  %v92_v25 = vld [vmem:[#allocation2 + $0x128] sm:$0xff]  ;;  %v91_v29 = vld [vmem:[#allocation2 + $0x120] sm:$0xff]  ;;  %v134_v6 = vld [vmem:[#allocation5 + $0x78] sm:$0xff] }
  0x31   :  { %744 = vmatprep.subr.bf16.mxu1 %v743_v15  ;;  %v751_v27 = vpack.c.bf16 %v92_v25, %v88_v24  ;;  %v96_v30 = vld [vmem:[#allocation2 + $0x148] sm:$0xff]  ;;  %v753_v32 = vpack.c.bf16 %v91_v29, %v87_v28  ;;  %v95_v34 = vld [vmem:[#allocation2 + $0x140] sm:$0xff]  ;;  %v57_v8 = vld [vmem:[#allocation2 + $0x10] sm:$0xff] }
  0x32   :  { %v100_v31 = vld [vmem:[#allocation2 + $0x168] sm:$0xff]  ;;  %v99_v35 = vld [vmem:[#allocation2 + $0x160] sm:$0xff]  ;;  %v61_v9 = vld [vmem:[#allocation2 + $0x30] sm:$0xff] }
  0x33   :  { %v755_v33 = vpack.c.bf16 %v100_v31, %v96_v30  ;;  %v104_v36 = vld [vmem:[#allocation2 + $0x188] sm:$0xff]  ;;  %v757_v38 = vpack.c.bf16 %v99_v35, %v95_v34  ;;  %v103_v39 = vld [vmem:[#allocation2 + $0x180] sm:$0xff]  ;;  %v66_v10 = vld [vmem:[#allocation2 + $0x58] sm:$0xff]  ;;  %v769_v17 = vpack.c.bf16 %v61_v9, %v57_v8 }
  0x34   :  { %746 = vmatpush1.bf16.msra.mxu1 %v745_v20  ;;  %v108_v37 = vld [vmem:[#allocation2 + $0x1a8] sm:$0xff]  ;;  %v107_v40 = vld [vmem:[#allocation2 + $0x1a0] sm:$0xff]  ;;  %v70_v11 = vld [vmem:[#allocation2 + $0x78] sm:$0xff] }
  0x35   :  { %748 = vmatprep.subr.bf16.mxu1 %v747_v21  ;;  %v759_v41 = vpack.c.bf16 %v108_v37, %v104_v36  ;;  %v112_v42 = vld [vmem:[#allocation2 + $0x1c8] sm:$0xff]  ;;  %v119_v46 = vld [vmem:[#allocation5] sm:$0xff]  ;;  %v761_v53 = vpack.c.bf16 %v107_v40, %v103_v39  ;;  %v133_v15 = vld [vmem:[#allocation5 + $0x70] sm:$0xff]  ;;  %v771_v20 = vpack.c.bf16 %v70_v11, %v66_v10 }
  0x36   :  { %v116_v43 = vld [vmem:[#allocation2 + $0x1e8] sm:$0xff]  ;;  %v801_v49 = vpack.c.bf16 %v121_v47, %v119_v46  ;;  %v123_v52 = vld [vmem:[#allocation5 + $0x20] sm:$0xff]  ;;  %v138_v19 = vld [vmem:[#allocation5 + $0x98] sm:$0xff] }
  0x37   :  { %v120_v44 = vld [vmem:[#allocation5 + $0x8] sm:$0xff]  ;;  %v763_v58 = vpack.c.bf16 %v116_v43, %v112_v42  ;;  %v111_v59 = vld [vmem:[#allocation2 + $0x1c0] sm:$0xff]  ;;  %v805_v63 = vpack.c.bf16 %v125_v55, %v123_v52  ;;  %v65_v21 = vld [vmem:[#allocation2 + $0x50] sm:$0xff] }
  0x38   :  { %750 = vmatpush1.bf16.msra.mxu1 %v749_v26  ;;  %v799_v48 = vpack.c.bf16 %v122_v45, %v120_v44  ;;  %v124_v50 = vld [vmem:[#allocation5 + $0x28] sm:$0xff]  ;;  %v115_v60 = vld [vmem:[#allocation2 + $0x1e0] sm:$0xff]  ;;  %v69_v22 = vld [vmem:[#allocation2 + $0x70] sm:$0xff] }
  0x39   :  { %752 = vmatprep.subr.bf16.mxu1 %v751_v27  ;;  %v803_v54 = vpack.c.bf16 %v126_v51, %v124_v50  ;;  %v128_v56 = vld [vmem:[#allocation5 + $0x48] sm:$0xff]  ;;  %v127_v2 = vld [vmem:[#allocation5 + $0x40] sm:$0xff]  ;;  %v765_v4 = vpack.c.bf16 %v115_v60, %v111_v59  ;;  %v74_v23 = vld [vmem:[#allocation2 + $0x98] sm:$0xff]  ;;  %v773_v29 = vpack.c.bf16 %v69_v22, %v65_v21 }
  0x3a   :  { %800 = vmatprep.subr.bf16.mxu0 %v799_v48  ;;  %v807_v1 = vpack.c.bf16 %v130_v57, %v128_v56  ;;  %v132_v5 = vld [vmem:[#allocation5 + $0x68] sm:$0xff]  ;;  %v809_v12 = vpack.c.bf16 %v129_v3, %v127_v2  ;;  %v131_v14 = vld [vmem:[#allocation5 + $0x60] sm:$0xff]  ;;  %v78_v24 = vld [vmem:[#allocation2 + $0xb8] sm:$0xff] }
  0x3b   :  { %802 = vmatpush1.bf16.msra.mxu0 %v801_v49  ;;  %v811_v13 = vpack.c.bf16 %v134_v6, %v132_v5  ;;  %v1119_v16 = vld [vmem:[%s1264_s0] sm:$0xff]  ;;  %v136_v18 = vld [vmem:[#allocation5 + $0x88] sm:$0xff]  ;;  %v813_v25 = vpack.c.bf16 %v133_v15, %v131_v14  ;;  %v137_v28 = vld [vmem:[#allocation5 + $0x90] sm:$0xff] }
  0x3c   :  { %754 = vmatpush1.bf16.msra.mxu1 %v753_v32  ;;  %804 = vmatprep.subr.bf16.mxu0 %v803_v54  ;;  %v815_v26 = vpack.c.bf16 %v138_v19, %v136_v18  ;;  %v135_v27 = vld [vmem:[#allocation5 + $0x80] sm:$0xff]  ;;  %v140_v30 = vld [vmem:[#allocation5 + $0xa8] sm:$0xff]  ;;  %v142_v31 = vld [vmem:[#allocation5 + $0xb8] sm:$0xff]  ;;  %v775_v32 = vpack.c.bf16 %v78_v24, %v74_v23 }
  0x3d   :  { %756 = vmatprep.subr.bf16.mxu1 %v755_v33  ;;  %v73_v33 = vld [vmem:[#allocation2 + $0x90] sm:$0xff]  ;;  %v82_v35 = vld [vmem:[#allocation2 + $0xd8] sm:$0xff]  ;;  %v817_v37 = vpack.c.bf16 %v137_v28, %v135_v27  ;;  %v139_v39 = vld [vmem:[#allocation5 + $0xa0] sm:$0xff] }
  0x3e   :  { %v77_v34 = vld [vmem:[#allocation2 + $0xb0] sm:$0xff]  ;;  %v86_v36 = vld [vmem:[#allocation2 + $0xf8] sm:$0xff]  ;;  %v144_v42 = vld [vmem:[#allocation5 + $0xc8] sm:$0xff] }
  0x3f   :  { %806 = vmatpush1.bf16.msra.mxu0 %v805_v63  ;;  %v141_v40 = vld [vmem:[#allocation5 + $0xb0] sm:$0xff]  ;;  %v146_v43 = vld [vmem:[#allocation5 + $0xd8] sm:$0xff]  ;;  %v143_v50 = vld [vmem:[#allocation5 + $0xc0] sm:$0xff] }
  0x40   :  { %758 = vmatpush1.bf16.msra.mxu1 %v757_v38  ;;  %808 = vmatprep.subr.bf16.mxu0 %v807_v1  ;;  %v819_v38 = vpack.c.bf16 %v142_v31, %v140_v30  ;;  %v81_v44 = vld [vmem:[#allocation2 + $0xd0] sm:$0xff]  ;;  %v90_v46 = vld [vmem:[#allocation2 + $0x118] sm:$0xff]  ;;  %v821_v48 = vpack.c.bf16 %v141_v40, %v139_v39  ;;  %v823_v49 = vpack.c.bf16 %v146_v43, %v144_v42  ;;  %v147_v62 = vld [vmem:[#allocation5 + $0xe0] sm:$0xff] }
  0x41   :  { %760 = vmatprep.subr.bf16.mxu1 %v759_v41  ;;  %v777_v41 = vpack.c.bf16 %v77_v34, %v73_v33  ;;  %v85_v45 = vld [vmem:[#allocation2 + $0xf0] sm:$0xff]  ;;  %v94_v47 = vld [vmem:[#allocation2 + $0x138] sm:$0xff]  ;;  %v152_v2 = vld [vmem:[#allocation5 + $0x108] sm:$0xff] }
  0x42   :  { %v145_v51 = vld [vmem:[#allocation5 + $0xd0] sm:$0xff]  ;;  %v781_v52 = vpack.c.bf16 %v85_v45, %v81_v44  ;;  %v150_v54 = vld [vmem:[#allocation5 + $0xf8] sm:$0xff]  ;;  %v783_v55 = vpack.c.bf16 %v94_v47, %v90_v46  ;;  %v151_v11 = vld [vmem:[#allocation5 + $0x100] sm:$0xff] }
  0x43   :  { %810 = vmatpush1.bf16.msra.mxu0 %v809_v12  ;;  %v89_v56 = vld [vmem:[#allocation2 + $0x110] sm:$0xff]  ;;  %v102_v59 = vld [vmem:[#allocation2 + $0x178] sm:$0xff]  ;;  %v825_v60 = vpack.c.bf16 %v145_v51, %v143_v50  ;;  %v156_v14 = vld [vmem:[#allocation5 + $0x128] sm:$0xff] }
  0x44   :  { %762 = vmatpush1.bf16.msra.mxu1 %v761_v53  ;;  %812 = vmatprep.subr.bf16.mxu0 %v811_v13  ;;  %v148_v53 = vld [vmem:[#allocation5 + $0xe8] sm:$0xff]  ;;  %v93_v57 = vld [vmem:[#allocation2 + $0x130] sm:$0xff]  ;;  %v154_v3 = vld [vmem:[#allocation5 + $0x118] sm:$0xff] }
  0x45   :  { %764 = vmatprep.subr.bf16.mxu1 %v763_v58  ;;  %v98_v58 = vld [vmem:[#allocation2 + $0x158] sm:$0xff]  ;;  %v827_v61 = vpack.c.bf16 %v150_v54, %v148_v53  ;;  %v149_v63 = vld [vmem:[#allocation5 + $0xf0] sm:$0xff]  ;;  %v785_v1 = vpack.c.bf16 %v93_v57, %v89_v56  ;;  %v831_v10 = vpack.c.bf16 %v154_v3, %v152_v2  ;;  %v155_v24 = vld [vmem:[#allocation5 + $0x120] sm:$0xff] }
  0x46   :  { %v97_v5 = vld [vmem:[#allocation2 + $0x150] sm:$0xff]  ;;  %v110_v8 = vld [vmem:[#allocation2 + $0x1b8] sm:$0xff]  ;;  %v829_v9 = vpack.c.bf16 %v149_v63, %v147_v62  ;;  %v160_v27 = vld [vmem:[#allocation5 + $0x148] sm:$0xff] }
  0x47   :  { %814 = vmatpush1.bf16.msra.mxu0 %v813_v25  ;;  %v101_v6 = vld [vmem:[#allocation2 + $0x170] sm:$0xff]  ;;  %v158_v15 = vld [vmem:[#allocation5 + $0x138] sm:$0xff]  ;;  %v159_v34 = vld [vmem:[#allocation5 + $0x140] sm:$0xff] }
  0x48   :  { %766 = vmatpush1.bf16.msra.mxu1 %v765_v4  ;;  %816 = vmatprep.subr.bf16.mxu0 %v815_v26  ;;  %v787_v4 = vpack.c.bf16 %v102_v59, %v98_v58  ;;  %v153_v12 = vld [vmem:[#allocation5 + $0x110] sm:$0xff]  ;;  %v789_v13 = vpack.c.bf16 %v101_v6, %v97_v5  ;;  %v118_v21 = vld [vmem:[#allocation2 + $0x1f8] sm:$0xff]  ;;  %v835_v23 = vpack.c.bf16 %v158_v15, %v156_v14  ;;  %v168_v43 = vld [vmem:[#allocation5 + $0x188] sm:$0xff] }
  0x49   :  { %768 = vmatprep.subr.bf16.mxu1 %v767_v7  ;;  %v106_v7 = vld [vmem:[#allocation2 + $0x198] sm:$0xff]  ;;  %v105_v18 = vld [vmem:[#allocation2 + $0x190] sm:$0xff]  ;;  %v833_v22 = vpack.c.bf16 %v153_v12, %v151_v11  ;;  %v167_v46 = vld [vmem:[#allocation5 + $0x180] sm:$0xff] }
  0x4a   :  { %v109_v19 = vld [vmem:[#allocation2 + $0x1b0] sm:$0xff]  ;;  %v162_v28 = vld [vmem:[#allocation5 + $0x158] sm:$0xff]  ;;  %v176_v54 = vld [vmem:[#allocation5 + $0x1c8] sm:$0xff] }
  0x4b   :  { %369 = vmatmul.mubr.f32.vlgmr.msra.gmra.mrb[0].mxu1 %v1119_v16  ;;  %818 = vmatpush1.bf16.msra.mxu0 %v817_v37  ;;  %v157_v25 = vld [vmem:[#allocation5 + $0x130] sm:$0xff]  ;;  %v793_v26 = vpack.c.bf16 %v109_v19, %v105_v18  ;;  %v839_v33 = vpack.c.bf16 %v162_v28, %v160_v27  ;;  %v164_v37 = vld [vmem:[#allocation5 + $0x168] sm:$0xff]  ;;  %v175_v58 = vld [vmem:[#allocation5 + $0x1c0] sm:$0xff] }
  0x4c   :  { %770 = vmatpush1.bf16.msra.mxu1 %v769_v17  ;;  %439 = vmatprep.mubr.f32.mxu1 %v1049_v0  ;;  %v779_v0 = vpack.c.bf16 %v86_v36, %v82_v35  ;;  %v791_v17 = vpack.c.bf16 %v110_v8, %v106_v7  ;;  %v113_v30 = vld [vmem:[#allocation2 + $0x1d0] sm:$0xff]  ;;  %v179_v63 = vld [vmem:[#allocation5 + $0x1e0] sm:$0xff]  ;;  %v184_v3 = vld [vmem:[#allocation5 + $0x208] sm:$0xff] }
  0x4d   :  { %772 = vmatprep.subr.bf16.mxu1 %v771_v20  ;;  %820 = vmatprep.subr.bf16.mxu0 %v819_v38  ;;  %v114_v20 = vld [vmem:[#allocation2 + $0x1d8] sm:$0xff]  ;;  %v117_v31 = vld [vmem:[#allocation2 + $0x1f0] sm:$0xff]  ;;  %v263_v6 = vld [vmem:[%s1269_s5 + $0x80] sm:$0xff] }
  0x4e   :  { %v161_v35 = vld [vmem:[#allocation5 + $0x150] sm:$0xff]  ;;  %v797_v36 = vpack.c.bf16 %v117_v31, %v113_v30  ;;  %v166_v38 = vld [vmem:[#allocation5 + $0x178] sm:$0xff]  ;;  %v264_v7 = vld [vmem:[%s1269_s5 + $0x88] sm:$0xff] }
  0x4f   :  { %822 = vmatpush1.bf16.msra.mxu0 %v821_v48  ;;  %v841_v39 = vpack.c.bf16 %v161_v35, %v159_v34  ;;  %v843_v40 = vpack.c.bf16 %v166_v38, %v164_v37  ;;  %v165_v42 = vld [vmem:[#allocation5 + $0x170] sm:$0xff]  ;;  %v172_v48 = vld [vmem:[#allocation5 + $0x1a8] sm:$0xff]  ;;  %v247_v8 = vld [vmem:[%s1269_s5] sm:$0xff] }
  0x50   :  { %774 = vmatpush1.bf16.msra.mxu1 %v773_v29  ;;  %824 = vmatprep.subr.bf16.mxu0 %v823_v49  ;;  %v795_v29 = vpack.c.bf16 %v118_v21, %v114_v20  ;;  %v169_v47 = vld [vmem:[#allocation5 + $0x190] sm:$0xff]  ;;  %v174_v49 = vld [vmem:[#allocation5 + $0x1b8] sm:$0xff]  ;;  %v267_v18 = vld [vmem:[%s1269_s5 + $0xa0] sm:$0xff] }
  0x51   :  { %776 = vmatprep.subr.bf16.mxu1 %v775_v32  ;;  %v837_v32 = vpack.c.bf16 %v157_v25, %v155_v24  ;;  %v849_v50 = vpack.c.bf16 %v169_v47, %v167_v46  ;;  %v851_v51 = vpack.c.bf16 %v174_v49, %v172_v48  ;;  %v173_v53 = vld [vmem:[#allocation5 + $0x1b0] sm:$0xff]  ;;  %v266_v12 = vld [vmem:[%s1269_s5 + $0x98] sm:$0xff]  ;;  %v268_v19 = vld [vmem:[%s1269_s5 + $0xa8] sm:$0xff] }
  0x52   :  { %v265_v11 = vld [vmem:[%s1269_s5 + $0x90] sm:$0xff]  ;;  %v935_v21 = vpack.c.bf16 %v268_v19, %v267_v18  ;;  %v270_v25 = vld [vmem:[%s1269_s5 + $0xb8] sm:$0xff]  ;;  %v271_v30 = vld [vmem:[%s1269_s5 + $0xc0] sm:$0xff] }
  0x53   :  { %826 = vmatpush1.bf16.msra.mxu0 %v825_v60  ;;  %v180_v60 = vld [vmem:[#allocation5 + $0x1e8] sm:$0xff]  ;;  %v931_v14 = vpack.c.bf16 %v266_v12, %v265_v11  ;;  %v249_v15 = vld [vmem:[%s1269_s5 + $0x10] sm:$0xff]  ;;  %v255_v34 = vld [vmem:[%s1269_s5 + $0x40] sm:$0xff] }
  0x54   :  { %778 = vmatpush1.bf16.msra.mxu1 %v777_v41  ;;  %828 = vmatprep.subr.bf16.mxu0 %v827_v61  ;;  %v163_v41 = vld [vmem:[#allocation5 + $0x160] sm:$0xff]  ;;  %v182_v61 = vld [vmem:[#allocation5 + $0x1f8] sm:$0xff]  ;;  %v269_v24 = vld [vmem:[%s1269_s5 + $0xb0] sm:$0xff] }
  0x55   :  { %780 = vmatprep.subr.bf16.mxu1 %v779_v0  ;;  %v170_v0 = vld [vmem:[#allocation5 + $0x198] sm:$0xff]  ;;  %v845_v44 = vpack.c.bf16 %v165_v42, %v163_v41  ;;  %v859_v62 = vpack.c.bf16 %v182_v61, %v180_v60  ;;  %v939_v27 = vpack.c.bf16 %v270_v25, %v269_v24  ;;  %v253_v28 = vld [vmem:[%s1269_s5 + $0x30] sm:$0xff]  ;;  %v272_v31 = vld [vmem:[%s1269_s5 + $0xc8] sm:$0xff] }
  0x56   :  { %v847_v45 = vpack.c.bf16 %v170_v0, %v168_v43  ;;  %v256_v35 = vld [vmem:[%s1269_s5 + $0x48] sm:$0xff]  ;;  %v274_v37 = vld [vmem:[%s1269_s5 + $0xd8] sm:$0xff]  ;;  %v275_v42 = vld [vmem:[%s1269_s5 + $0xe0] sm:$0xff] }
  0x57   :  { %830 = vmatpush1.bf16.msra.mxu0 %v829_v9  ;;  %v927_v9 = vpack.c.bf16 %v264_v7, %v263_v6  ;;  %v945_v38 = vpack.c.bf16 %v256_v35, %v255_v34  ;;  %v258_v41 = vld [vmem:[%s1269_s5 + $0x58] sm:$0xff]  ;;  %v276_v43 = vld [vmem:[%s1269_s5 + $0xe8] sm:$0xff]  ;;  %v1208_v48 = vld [vmem:[%s1266_s2] sm:$0xf] }
  0x58   :  { %782 = vmatpush1.bf16.msra.mxu1 %v781_v52  ;;  %832 = vmatprep.subr.bf16.mxu0 %v831_v10  ;;  %v171_v52 = vld [vmem:[#allocation5 + $0x1a0] sm:$0xff]  ;;  %v248_v10 = vld [vmem:[%s1269_s5 + $0x8] sm:$0xff]  ;;  %v193_v7 = vld [vmem:[#allocation5 + $0x250] sm:$0xff] }
  0x59   :  { %784 = vmatprep.subr.bf16.mxu1 %v783_v55  ;;  %v178_v55 = vld [vmem:[#allocation5 + $0x1d8] sm:$0xff]  ;;  %v853_v56 = vpack.c.bf16 %v173_v53, %v171_v52  ;;  %v191_v6 = vld [vmem:[#allocation5 + $0x240] sm:$0xff] }
  0x5a   :  { %v855_v57 = vpack.c.bf16 %v178_v55, %v176_v54  ;;  %v183_v55 = vld [vmem:[#allocation5 + $0x200] sm:$0xff]  ;;  %v214_v34 = vld [vmem:[#allocation5 + $0x2f8] sm:$0xff] }
  0x5b   :  { %834 = vmatpush1.bf16.msra.mxu0 %v833_v22  ;;  %v251_v22 = vld [vmem:[%s1269_s5 + $0x20] sm:$0xff] }
  0x5c   :  { %786 = vmatpush1.bf16.msra.mxu1 %v785_v1  ;;  %836 = vmatprep.subr.bf16.mxu0 %v835_v23  ;;  %v181_v1 = vld [vmem:[#allocation5 + $0x1f0] sm:$0xff]  ;;  %v252_v23 = vld [vmem:[%s1269_s5 + $0x28] sm:$0xff]  ;;  %v195_v12 = vld [vmem:[#allocation5 + $0x260] sm:$0xff] }
  0x5d   :  { %788 = vmatprep.subr.bf16.mxu1 %v787_v4  ;;  %v861_v2 = vpack.c.bf16 %v181_v1, %v179_v63  ;;  %v186_v4 = vld [vmem:[#allocation5 + $0x218] sm:$0xff]  ;;  %v187_v63 = vld [vmem:[#allocation5 + $0x220] sm:$0xff]  ;;  %v189_v1 = vld [vmem:[#allocation5 + $0x230] sm:$0xff] }
  0x5e   :  { %v863_v5 = vpack.c.bf16 %v186_v4, %v184_v3  ;;  %v194_v3 = vld [vmem:[#allocation5 + $0x258] sm:$0xff]  ;;  %v869_v4 = vpack.c.bf16 %v189_v1, %v187_v63  ;;  %v199_v19 = vld [vmem:[#allocation5 + $0x280] sm:$0xff]  ;;  %v225_v1 = vld [vmem:[#allocation5 + $0x350] sm:$0xff] }
  0x5f   :  { %838 = vmatpush1.bf16.msra.mxu0 %v837_v32  ;;  %v203_v25 = vld [vmem:[#allocation5 + $0x2a0] sm:$0xff] }
  0x60   :  { %790 = vmatpush1.bf16.msra.mxu1 %v789_v13  ;;  %840 = vmatprep.subr.bf16.mxu0 %v839_v33  ;;  %v929_v13 = vpack.c.bf16 %v248_v10, %v247_v8  ;;  %v943_v33 = vpack.c.bf16 %v272_v31, %v271_v30  ;;  %v196_v8 = vld [vmem:[#allocation5 + $0x268] sm:$0xff]  ;;  %v873_v10 = vpack.c.bf16 %v193_v7, %v191_v6  ;;  %v207_v31 = vld [vmem:[#allocation5 + $0x2c0] sm:$0xff]  ;;  %v229_v7 = vld [vmem:[#allocation5 + $0x370] sm:$0xff] }
  0x61   :  { %792 = vmatprep.subr.bf16.mxu1 %v791_v17  ;;  %v250_v17 = vld [vmem:[%s1269_s5 + $0x18] sm:$0xff]  ;;  %v223_v63 = vld [vmem:[#allocation5 + $0x340] sm:$0xff] }
  0x62   :  { %v933_v20 = vpack.c.bf16 %v250_v17, %v249_v15  ;;  %v202_v15 = vld [vmem:[#allocation5 + $0x298] sm:$0xff]  ;;  %v227_v6 = vld [vmem:[#allocation5 + $0x360] sm:$0xff] }
  0x63   :  { %842 = vmatpush1.bf16.msra.mxu0 %v841_v39 }
  0x64   :  { %794 = vmatpush1.bf16.msra.mxu1 %v793_v26  ;;  %844 = vmatprep.subr.bf16.mxu0 %v843_v40  ;;  %v937_v26 = vpack.c.bf16 %v252_v23, %v251_v22  ;;  %v257_v40 = vld [vmem:[%s1269_s5 + $0x50] sm:$0xff]  ;;  %v206_v22 = vld [vmem:[#allocation5 + $0x2b8] sm:$0xff] }
  0x65   :  { %796 = vmatprep.subr.bf16.mxu1 %v795_v29  ;;  %v254_v29 = vld [vmem:[%s1269_s5 + $0x38] sm:$0xff]  ;;  %v949_v0 = vpack.c.bf16 %v258_v41, %v257_v40  ;;  %v216_v40 = vld [vmem:[#allocation5 + $0x308] sm:$0xff] }
  0x66   :  { %v941_v32 = vpack.c.bf16 %v254_v29, %v253_v28  ;;  %v210_v28 = vld [vmem:[#allocation5 + $0x2d8] sm:$0xff] }
  0x67   :  { %846 = vmatpush1.bf16.msra.mxu0 %v845_v44  ;;  %v951_v44 = vpack.c.bf16 %v276_v43, %v275_v42  ;;  %v218_v41 = vld [vmem:[#allocation5 + $0x318] sm:$0xff] }
  0x68   :  { %798 = vmatpush1.bf16.msra.mxu1 %v797_v36  ;;  %848 = vmatprep.subr.bf16.mxu0 %v847_v45  ;;  %v273_v36 = vld [vmem:[%s1269_s5 + $0xd0] sm:$0xff]  ;;  %v284_v45 = vlaneseq }
  0x69   :  { %928 = vmatprep.subr.bf16.mxu1 %v927_v9  ;;  %v947_v39 = vpack.c.bf16 %v274_v37, %v273_v36  ;;  %v198_v9 = vld [vmem:[#allocation5 + $0x278] sm:$0xff] }
  0x6a   :  { %v1202_v46 = vshrl.u32 %v284_v45, 7  ;;  %v875_v11 = vpack.c.bf16 %v198_v9, %v196_v8  ;;  %v215_v45 = vld [vmem:[#allocation5 + $0x300] sm:$0xff]  ;;  %v232_v8 = vld [vmem:[#allocation5 + $0x388] sm:$0xff]  ;;  %v234_v9 = vld [vmem:[#allocation5 + $0x398] sm:$0xff] }
  0x6b   :  { %440 = vmatmul.mubr.f32.vlgmr.msra.gmra.mrb[2].mxu1 %v1119_v16  ;;  %850 = vmatpush1.bf16.msra.mxu0 %v849_v50  ;;  %v177_v16 = vld [vmem:[#allocation5 + $0x1d0] sm:$0xff] }
  0x6c   :  { %852 = vmatprep.subr.bf16.mxu0 %v851_v51  ;;  %v857_v59 = vpack.c.bf16 %v177_v16, %v175_v58  ;;  %930 = vmatpush3.bf16.msra.mxu1 %v929_v13  ;;  %v286_v47 = vsub.s32 0, %v1202_v46  ;;  %v290_v49 = vsub.s32 1, %v1202_v46  ;;  %v188_v58 = vld [vmem:[#allocation5 + $0x228] sm:$0xff]  ;;  %v190_v16 = vld [vmem:[#allocation5 + $0x238] sm:$0xff]  ;;  %v197_v13 = vld [vmem:[#allocation5 + $0x270] sm:$0xff]  ;;  %v298_v35 = vsub.s32 3, %v1202_v46 }
  0x6d   :  { %932 = vmatprep.subr.bf16.mxu1 %v931_v14  ;;  %v200_v14 = vld [vmem:[#allocation5 + $0x288] sm:$0xff]  ;;  %v877_v17 = vpack.c.bf16 %v197_v13, %v195_v12  ;;  %v231_v12 = vld [vmem:[#allocation5 + $0x380] sm:$0xff]  ;;  %v233_v13 = vld [vmem:[#allocation5 + $0x390] sm:$0xff] }
  0x6e   :  { %v287_v50 = vrot.slane %v1208_v48, %v286_v47  ;;  %v291_v51 = vrot.slane %v1208_v48, %v290_v49  ;;  %v879_v18 = vpack.c.bf16 %v202_v15, %v200_v14  ;;  %v299_v42 = vrot.slane %v1208_v48, %v298_v35  ;;  %v236_v14 = vld [vmem:[#allocation5 + $0x3a8] sm:$0xff]  ;;  %v238_v15 = vld [vmem:[#allocation5 + $0x3b8] sm:$0xff] }
  0x6f   :  { %854 = vmatpush1.bf16.msra.mxu0 %v853_v56  ;;  %v185_v56 = vld [vmem:[#allocation5 + $0x210] sm:$0xff] }
  0x70   :  { %856 = vmatprep.subr.bf16.mxu0 %v855_v57  ;;  %934 = vmatpush3.bf16.msra.mxu1 %v933_v20  ;;  %v865_v60 = vpack.c.bf16 %v185_v56, %v183_v55  ;;  %v201_v20 = vld [vmem:[#allocation5 + $0x290] sm:$0xff] }
  0x71   :  { %936 = vmatprep.subr.bf16.mxu1 %v935_v21  ;;  %v204_v21 = vld [vmem:[#allocation5 + $0x2a8] sm:$0xff]  ;;  %v881_v23 = vpack.c.bf16 %v201_v20, %v199_v19  ;;  %v235_v19 = vld [vmem:[#allocation5 + $0x3a0] sm:$0xff]  ;;  %v237_v20 = vld [vmem:[#allocation5 + $0x3b0] sm:$0xff] }
  0x72   :  { %v883_v24 = vpack.c.bf16 %v206_v22, %v204_v21  ;;  %v240_v21 = vld [vmem:[#allocation5 + $0x3c8] sm:$0xff]  ;;  %v242_v22 = vld [vmem:[#allocation5 + $0x3d8] sm:$0xff] }
  0x73   :  { %858 = vmatpush1.bf16.msra.mxu0 %v857_v59 }
  0x74   :  { %860 = vmatprep.subr.bf16.mxu0 %v859_v62  ;;  %938 = vmatpush3.bf16.msra.mxu1 %v937_v26  ;;  %v867_v62 = vpack.c.bf16 %v190_v16, %v188_v58  ;;  %v205_v26 = vld [vmem:[#allocation5 + $0x2b0] sm:$0xff]  ;;  %v219_v58 = vld [vmem:[#allocation5 + $0x320] sm:$0xff] }
  0x75   :  { %940 = vmatprep.subr.bf16.mxu1 %v939_v27  ;;  %v208_v27 = vld [vmem:[#allocation5 + $0x2c8] sm:$0xff]  ;;  %v885_v29 = vpack.c.bf16 %v205_v26, %v203_v25  ;;  %v221_v16 = vld [vmem:[#allocation5 + $0x330] sm:$0xff]  ;;  %v919_v25 = vpack.c.bf16 %v242_v22, %v240_v21  ;;  %v239_v26 = vld [vmem:[#allocation5 + $0x3c0] sm:$0xff] }
  0x76   :  { %v887_v30 = vpack.c.bf16 %v210_v28, %v208_v27  ;;  %v241_v27 = vld [vmem:[#allocation5 + $0x3d0] sm:$0xff]  ;;  %v244_v28 = vld [vmem:[#allocation5 + $0x3e8] sm:$0xff] }
  0x77   :  { %862 = vmatpush1.bf16.msra.mxu0 %v861_v2  ;;  %v192_v2 = vld [vmem:[#allocation5 + $0x248] sm:$0xff] }
  0x78   :  { %864 = vmatprep.subr.bf16.mxu0 %v863_v5  ;;  %942 = vmatpush3.bf16.msra.mxu1 %v941_v32  ;;  %v871_v5 = vpack.c.bf16 %v194_v3, %v192_v2  ;;  %v209_v32 = vld [vmem:[#allocation5 + $0x2d0] sm:$0xff]  ;;  %v228_v2 = vld [vmem:[#allocation5 + $0x368] sm:$0xff]  ;;  %v230_v3 = vld [vmem:[#allocation5 + $0x378] sm:$0xff] }
  0x79   :  { %944 = vmatprep.subr.bf16.mxu1 %v943_v33  ;;  %v212_v33 = vld [vmem:[#allocation5 + $0x2e8] sm:$0xff]  ;;  %v889_v36 = vpack.c.bf16 %v209_v32, %v207_v31 }
  0x7a   :  { %v891_v37 = vpack.c.bf16 %v214_v34, %v212_v33  ;;  %v243_v33 = vld [vmem:[#allocation5 + $0x3e0] sm:$0xff]  ;;  %v245_v34 = vld [vmem:[#allocation5 + $0x3f0] sm:$0xff] }
  0x7b   :  { %v925_v35 = vpack.c.bf16 %v245_v34, %v243_v33 }
  0x7c   :  { %946 = vmatpush3.bf16.msra.mxu1 %v945_v38  ;;  %v211_v38 = vld [vmem:[#allocation5 + $0x2e0] sm:$0xff] }
  0x7d   :  { %948 = vmatprep.subr.bf16.mxu1 %v947_v39  ;;  %v213_v39 = vld [vmem:[#allocation5 + $0x2f0] sm:$0xff] }
  0x7e   :  { %v893_v43 = vpack.c.bf16 %v213_v39, %v211_v38  ;;  %v259_v38 = vld [vmem:[%s1269_s5 + $0x60] sm:$0xff] }
  0x80   :  { %950 = vmatpush3.bf16.msra.mxu1 %v949_v0 }
  0x81   :  { %952 = vmatprep.subr.bf16.mxu1 %v951_v44  ;;  %v895_v44 = vpack.c.bf16 %v218_v41, %v216_v40  ;;  %v277_v40 = vld [vmem:[%s1269_s5 + $0xf0] sm:$0xff]  ;;  %v278_v41 = vld [vmem:[%s1269_s5 + $0xf8] sm:$0xff] }
 0x11e   :  { %v370_v52 = vpop.f32.mrb[0].mxu1 }
 0x11f   :  { %v371_v53 = vadd.f32 %v370_v52, %v287_v50  ;;  %v372_v54 = vpop.f32.mrb[1].mxu1  ;;  %v217_v50 = vld [vmem:[#allocation5 + $0x310] sm:$0xff]  ;;  %v220_v52 = vld [vmem:[#allocation5 + $0x328] sm:$0xff] }
 0x120   :  { %v373_v57 = vadd.f32 %v372_v54, %v291_v51  ;;  %v897_v55 = vpack.c.bf16 %v217_v50, %v215_v45  ;;  %v280_v45 = vld [vmem:[%s1268_s4] sm:$0x3]  ;;  %s1050_s4 = smov [#allocation7]  }
 0x121   :  { %v446_v61 = vmax.f32 %v371_v53, 0.0  ;;  %v222_v53 = vld [vmem:[#allocation5 + $0x338] sm:$0xff]  ;;  %v454_v50 = vrot.slane %v280_v45, %v286_v47  ;;  %s689_s21 = sshll.u32 %s1050_s4, 4  ;;  %s690_s21 = int_to_ptr.vmem [resolvable:$true] %s689_s21 }
 0x122   :  { %v447_v59 = vmax.f32 %v373_v57, 0.0  ;;  %v899_v57 = vpack.c.bf16 %v222_v53, %v220_v52  ;;  %s1015_s22 = scalar_lea.vmem %s690_s21, 128  ;;  %p1020_p3 = scmp.lt.s32.totalorder %s690_s21, %s690_s21 }
 0x123   :  { %p1016_p2 = scmp.ne.s32.totalorder %s690_s21, %s1015_s22  ;;  %p1021_p4 = scmp.lt.s32.totalorder %s1015_s22, %s1015_s22 }
 0x124   :  { %525 = vmatprep.mubr.f32.mxu0 %v447_v59  ;;  %v224_v59 = vld [vmem:[#allocation5 + $0x348] sm:$0xff] }
 0x125   :  { %526 = vmatmul.mubr.f32.vlgmr.msra.gmra.mrb[0].mxu0 %v446_v61  ;;  %v901_v61 = vpack.c.bf16 %v221_v16, %v219_v58  ;;  %v699_v16 = vld [vmem:[%s1270_s6] ss:$0 sm:$0xff]  ;;  %p1022_p5 = por %p1021_p4, %p1020_p3 }
 0x126   :  { %866 = vmatpush1.bf16.msra.mxu0 %v865_v60  ;;  %v226_v60 = vld [vmem:[#allocation5 + $0x358] sm:$0xff] }
 0x127   :  { %868 = vmatprep.subr.bf16.mxu0 %v867_v62  ;;  %v903_v62 = vpack.c.bf16 %v226_v60, %v224_v59  ;;  %p1023_p6 = pnand %p1022_p5, %p1016_p2 }
 0x12a   :  { %870 = vmatpush1.bf16.msra.mxu0 %v869_v4  ;;  %v905_v4 = vpack.c.bf16 %v225_v1, %v223_v63 }
 0x12b   :  { %872 = vmatprep.subr.bf16.mxu0 %v871_v5  ;;  %v907_v5 = vpack.c.bf16 %v230_v3, %v228_v2 }
 0x12e   :  { %874 = vmatpush1.bf16.msra.mxu0 %v873_v10  ;;  %v909_v10 = vpack.c.bf16 %v229_v7, %v227_v6 }
 0x12f   :  { %876 = vmatprep.subr.bf16.mxu0 %v875_v11  ;;  %v911_v11 = vpack.c.bf16 %v234_v9, %v232_v8 }
 0x132   :  { %878 = vmatpush1.bf16.msra.mxu0 %v877_v17  ;;  %v913_v17 = vpack.c.bf16 %v233_v13, %v231_v12 }
 0x133   :  { %880 = vmatprep.subr.bf16.mxu0 %v879_v18  ;;  %v915_v18 = vpack.c.bf16 %v238_v15, %v236_v14 }
 0x136   :  { %882 = vmatpush1.bf16.msra.mxu0 %v881_v23  ;;  %v917_v23 = vpack.c.bf16 %v237_v20, %v235_v19 }
 0x137   :  { %884 = vmatprep.subr.bf16.mxu0 %v883_v24  ;;  %v294_v24 = vsub.s32 2, %v1202_v46 }
 0x139   :  { %v295_v31 = vrot.slane %v1208_v48, %v294_v24  ;;  %v260_v48 = vld [vmem:[%s1269_s5 + $0x68] sm:$0xff] }
 0x13a   :  { %886 = vmatpush1.bf16.msra.mxu0 %v885_v29  ;;  %v246_v29 = vld [vmem:[#allocation5 + $0x3f8] sm:$0xff]  ;;  %v953_v39 = vpack.c.bf16 %v260_v48, %v259_v38 }
 0x13b   :  { %888 = vmatprep.subr.bf16.mxu0 %v887_v30  ;;  %v921_v30 = vpack.c.bf16 %v241_v27, %v239_v26  ;;  %v923_v32 = vpack.c.bf16 %v246_v29, %v244_v28 }
 0x13c   :  { %954 = vmatpush3.bf16.msra.mxu1 %v953_v39 }
 0x13e   :  { %890 = vmatpush1.bf16.msra.mxu0 %v889_v36  ;;  %v1219_v0 = vpop.f32.mrb[2].mxu1 }
 0x13f   :  { %892 = vmatprep.subr.bf16.mxu0 %v891_v37  ;;  %v443_v51 = vpop.f32.mrb[3].mxu1  ;;  %v442_v36 = vadd.f32 %v1219_v0, %v295_v31  ;;  %v262_v0 = vld [vmem:[%s1269_s5 + $0x78] sm:$0xff] }
 0x140   :  { %v444_v54 = vadd.f32 %v443_v51, %v299_v42  ;;  %v955_v42 = vpack.c.bf16 %v278_v41, %v277_v40  ;;  %v458_v51 = vrot.slane %v280_v45, %v290_v49 }
 0x141   :  { %v448_v37 = vmax.f32 %v442_v36, 0.0 }
 0x142   :  { %894 = vmatpush1.bf16.msra.mxu0 %v893_v43  ;;  %v449_v56 = vmax.f32 %v444_v54, 0.0  ;;  %v261_v43 = vld [vmem:[%s1269_s5 + $0x70] sm:$0xff]  ;;  %956 = vmatprep.subr.bf16.mxu1 %v955_v42 }
 0x143   :  { %896 = vmatprep.subr.bf16.mxu0 %v895_v44  ;;  %v957_v44 = vpack.c.bf16 %v262_v0, %v261_v43 }
 0x144   :  { %596 = vmatprep.mubr.f32.mxu0 %v449_v56 }
 0x145   :  { %958 = vmatpush3.bf16.msra.mxu1 %v957_v44 }
 0x146   :  { %898 = vmatpush1.bf16.msra.mxu0 %v897_v55 }
 0x147   :  { %900 = vmatprep.subr.bf16.mxu0 %v899_v57 }
 0x14a   :  { %902 = vmatpush1.bf16.msra.mxu0 %v901_v61 }
 0x14b   :  { %904 = vmatprep.subr.bf16.mxu0 %v903_v62 }
 0x14e   :  { %906 = vmatpush1.bf16.msra.mxu0 %v905_v4 }
 0x14f   :  { %908 = vmatprep.subr.bf16.mxu0 %v907_v5 }
 0x152   :  { %910 = vmatpush1.bf16.msra.mxu0 %v909_v10 }
 0x153   :  { %912 = vmatprep.subr.bf16.mxu0 %v911_v11 }
 0x156   :  { %914 = vmatpush1.bf16.msra.mxu0 %v913_v17 }
 0x157   :  { %916 = vmatprep.subr.bf16.mxu0 %v915_v18 }
 0x15a   :  { %918 = vmatpush1.bf16.msra.mxu0 %v917_v23 }
 0x15b   :  { %920 = vmatprep.subr.bf16.mxu0 %v919_v25 }
 0x15e   :  { %922 = vmatpush1.bf16.msra.mxu0 %v921_v30 }
 0x15f   :  { %924 = vmatprep.subr.bf16.mxu0 %v923_v32 }
 0x162   :  { %926 = vmatpush1.bf16.msra.mxu0 %v925_v35 }
 0x165   :  { %597 = vmatmul.mubr.f32.vlgmr.msra.gmra.mrb[0].mxu0 %v448_v37 }
 0x238   :  { %v598_v52 = vpop.f32.mrb[0].mxu0 }
 0x239   :  { %v959_v53 = vadd.f32 %v598_v52, %v454_v50  ;;  %v600_v54 = vpop.f32.mrb[1].mxu0 }
 0x23a   :  { %v960_v55 = vadd.f32 %v600_v54, %v458_v51 }
 0x23b   :  { %v603_v57 = vmax.f32 %v959_v53, 0.0 }
 0x23c   :  { %v604_v56 = vmax.f32 %v960_v55, 0.0 }
 0x23e   :  { %675 = vmatprep.mubr.f32.mxu1 %v604_v56 }
 0x23f   :  { %676 = vmatmul.mubr.f32.vlgmr.msra.gmra.mrb[4].mxu1 %v603_v57 }
 0x312   :  { %v732_v58 = vpop.f32.mrb[4].mxu1 }
 0x313   :  { %v733_v59 = vpop.f32.mrb[5].mxu1 }
 0x314   :  { %v734_v47 = vadd.f32 %v733_v59, %v732_v58 }
 0x316   :  { %v678_v46 = vadd.f32 %v734_v47, %v699_v16 }
 0x318   :  { %682 = vst.msk [vmem:[#allocation7] sm:$0xff] %vm681_vm0, %v678_v46 }
 0x319   :  { %1026 = shalt.err (!%p1023_p6)
}
 0x31a   :  { %s1027_s1 = scalar_lea.hbm %s1271_s7, 128 }
 0x31b   :  { %p1028_p7 = scmp.ne.s32.totalorder %s1271_s7, %s1027_s1  ;;  %p1031_p8 = scmp.lt.u32.totalorder %s1027_s1, %s1271_s7 }
 0x31d   :  { %p1033_p9 = pnand %p1031_p8, %p1028_p7 }
 0x31f   :  { %1036 = shalt.err (!%p1033_p9)
}
 0x320   :  { %692 = dma.vmem_to_hbm [thread:$0]  %s690_s21, 128, %s1271_s7, [#allocation4]  }
 0x321   :  { %1041 = dma.done.wait [#allocation4], 128  }
 0x322   :  { %1042 = vsyncadd [#allocation4], 4294967168 }
 0x323   :  { %696 = vsyncpa [#allocation3], 1 }
 0x324   :  { %697 = vsyncpa [#allocation6], 1 }
 0x325   :  { %698 = vsyncpa [#allocation4], 1 }

</bundles_post_ra>
